<compile_context>
chip_gen: v7x
topology: tpu7x:2x2x1
jax: 0.10.0
libtpu: 0.0.40
codegen_flags: <defaults>
</compile_context>

<pallas_src>
import functools

import jax
import jax.numpy as jnp
from jax.experimental import pallas as pl
from jax.experimental.pallas import tpu as pltpu


def _round_up(x, m):
    return (x + m - 1) // m * m


def _pick_row_tile(rows):
    """Row tile for the decode grid (rows is always a multiple of 8)."""
    if rows <= 512:
        return rows
    best = rows
    for cand in range(16, 513, 16):        # bf16-friendly (multiple of 16)
        if rows % cand == 0:
            best = cand
    return best


def _pick_col_tile(op):
    """Lane tile for the decode grid (op is always a multiple of 128)."""
    for cand in (2048, 1024, 512, 256, 128):
        if op % cand == 0:
            return cand
    return op


# ---------------------------------------------------------------------------
# Kernel A: input projection + serial tanh recurrence (single program).
# ---------------------------------------------------------------------------
def rnn_recurrence_kernel(x_ref, wih_ref, whh_ref, bias_ref, h0_ref,
                          hall_out_ref, hT_ref, xp_ref, hall_ref,
                          *, seq_len, batch_p):
    """x_ref     : [T*Bp, Hp] bf16   embedded tokens, time-major (row = t*Bp+b)
    wih_ref   : [Hp, Hp]   bf16   W_ih^T
    whh_ref   : [Hp, Hp]   bf16   W_hh^T
    bias_ref  : [1, Hp]    f32    b_ih + b_hh (pre-summed)
    h0_ref    : [Bp, Hp]   f32    initial hidden state
    hall_out_ref: [Bp*T, Hp] bf16 all hidden states, row = b*T + t
    hT_ref    : [Bp, Hp]   f32    final hidden state
    xp_ref    : [T*Bp, Hp] f32    scratch: x @ W_ih^T + bias
    hall_ref  : [T*Bp, Hp] f32    scratch: hidden states, time-major
    """
    T, Bp = seq_len, batch_p
    Hp = x_ref.shape[-1]

    # (1) Time-independent input projection for ALL steps in one bf16 MXU
    #     matmul, bias folded in, result parked in a VMEM scratch.
    xp_ref[...] = (jnp.dot(x_ref[...], wih_ref[...],
                           preferred_element_type=jnp.float32)
                   + bias_ref[...])

    # (2) Serial recurrence.  T is small & static -> fully unrolled.  Each
    #     step: one bf16 matmul + tanh; the hidden-state store is a full
    #     (8,128)-aligned f32 tile store (no masked sublane stores).
    whh = whh_ref[...]
    h = h0_ref[...]
    for t in range(T):
        row = t * Bp                                   # static, 8-aligned
        h = jnp.tanh(xp_ref[pl.ds(row, Bp), :]
                     + jnp.dot(h.astype(jnp.bfloat16), whh,
                               preferred_element_type=jnp.float32))
        hall_ref[pl.ds(row, Bp), :] = h
    hT_ref[...] = h

    # (3) One-time reorder (off the critical path): time-major [T,Bp,Hp] ->
    #     [Bp,T,Hp] so the flattened row order is b*T + t, exactly torch's
    #     output.reshape(B*T, H).  Cast to bf16 once for the decode matmul.
    h_bt = jnp.transpose(hall_ref[...].reshape(T, Bp, Hp), (1, 0, 2))
    hall_out_ref[...] = h_bt.reshape(Bp * T, Hp).astype(jnp.bfloat16)


# ---------------------------------------------------------------------------
# Kernel B: grid-tiled decoder (streams logits, megacore-parallel).
# ---------------------------------------------------------------------------
def decode_kernel(h_ref, w_ref, b_ref, out_ref):
    out_ref[...] = (jnp.dot(h_ref[...], w_ref[...],
                            preferred_element_type=jnp.float32)
                    + b_ref[...])


# ---------------------------------------------------------------------------
# Wrapper.
# ---------------------------------------------------------------------------
def prepare_params(params):
    """Pad + cast weights/biases ONCE (outside the per-call path)."""
    V, H = params["emb"].shape
    O = params["dec_w_t"].shape[1]
    Hp = _round_up(H, 128)
    Op = _round_up(O, 128)
    return {
        "H": H, "O": O, "Hp": Hp, "Op": Op,
        # Pad the embedding table (not x) so the gather is already lane-padded.
        "emb_p":   jnp.pad(params["emb"], ((0, 0), (0, Hp - H))).astype(jnp.bfloat16),
        "w_ih_t":  jnp.pad(params["w_ih_t"], ((0, Hp - H), (0, Hp - H))).astype(jnp.bfloat16),
        "w_hh_t":  jnp.pad(params["w_hh_t"], ((0, Hp - H), (0, Hp - H))).astype(jnp.bfloat16),
        "bias":    jnp.pad(params["b_ih"] + params["b_hh"], ((0, 0), (0, Hp - H))),
        "dec_w_t": jnp.pad(params["dec_w_t"], ((0, Hp - H), (0, Op - O))).astype(jnp.bfloat16),
        "dec_b":   jnp.pad(params["dec_b"], ((0, 0), (0, Op - O))),
    }


def char_rnn_forward(tokens, hidden, prep):
    """tokens: [B, T] int32; hidden: [num_layers=1, B, H] float32.

    Returns (logits [B*T, O], hidden_out [1, B, H]) like CharRNN.forward.
    """
    B, T = tokens.shape
    H, O, Hp, Op = prep["H"], prep["O"], prep["Hp"], prep["Op"]
    Bp = _round_up(B, 8)   # sublane multiple.  NOTE: for real workloads pack
                           # more sequences per call -- up to 128/256 LHS rows
                           # the per-step recurrent matmul is ~free.

    # Embedding lookup: pad tokens (row index 0 is valid; padded batch rows are
    # discarded), gather time-major directly from the pre-padded bf16 table.
    tok_p = jnp.pad(tokens, ((0, Bp - B), (0, 0)))
    x = prep["emb_p"][tok_p.T].reshape(T * Bp, Hp)            # [T*Bp, Hp] bf16
    h0 = jnp.pad(hidden[0], ((0, Bp - B), (0, Hp - H)))       # [Bp, Hp]  f32

    vmem = pl.BlockSpec(memory_space=pltpu.MemorySpace.VMEM)
    h_all, hT = pl.pallas_call(
        functools.partial(rnn_recurrence_kernel, seq_len=T, batch_p=Bp),
        out_shape=(jax.ShapeDtypeStruct((Bp * T, Hp), jnp.bfloat16),
                   jax.ShapeDtypeStruct((Bp, Hp), jnp.float32)),
        in_specs=[vmem] * 5,
        out_specs=(vmem, vmem),
        scratch_shapes=[pltpu.VMEM((T * Bp, Hp), jnp.float32),   # x_proj
                        pltpu.VMEM((T * Bp, Hp), jnp.float32)],  # hall
    )(x, prep["w_ih_t"], prep["w_hh_t"], prep["bias"], h0)

    # Grid-tiled decode: streams lane-dense logits tiles to HBM; both axes
    # "parallel" so it shards across v7x's two TensorCores.
    rows = Bp * T
    tr = _pick_row_tile(rows)
    to = _pick_col_tile(Op)
    logits_p = pl.pallas_call(
        decode_kernel,
        out_shape=jax.ShapeDtypeStruct((rows, Op), jnp.float32),
        grid=(rows // tr, Op // to),
        in_specs=[pl.BlockSpec((tr, Hp), lambda i, j: (i, 0)),
                  pl.BlockSpec((Hp, to), lambda i, j: (0, j)),
                  pl.BlockSpec((1, to), lambda i, j: (0, j))],
        out_specs=pl.BlockSpec((tr, to), lambda i, j: (i, j)),
        compiler_params=pltpu.CompilerParams(
            dimension_semantics=("parallel", "parallel")),
    )(h_all, prep["dec_w_t"], prep["dec_b"])

    # Row order already matches torch (b*T + t): slice padding only.
    logits = logits_p.reshape(Bp, T, Op)[:B, :, :O].reshape(B * T, O)
    hidden_out = hT[:B, :H][None]                             # [1, B, H]
    return logits, hidden_out


def char_rnn_reference(tokens, hidden, params):
    """Pure-JAX f32 reference mirroring nn.Embedding + nn.RNN(tanh) + nn.Linear."""
    B, T = tokens.shape
    emb = params["emb"][tokens]                               # [B, T, H]
    h = hidden[0]
    outs = []
    for t in range(T):
        h = jnp.tanh(emb[:, t] @ params["w_ih_t"] + params["b_ih"]
                     + h @ params["w_hh_t"] + params["b_hh"])
        outs.append(h @ params["dec_w_t"] + params["dec_b"])
    out = jnp.stack(outs, axis=1).reshape(B * T, -1)
    return out, h[None]


def init_params(key, input_size, hidden_size, output_size):
    ks = jax.random.split(key, 7)
    s = 1.0 / jnp.sqrt(hidden_size)
    return {
        "emb":     jax.random.normal(ks[0], (input_size, hidden_size), jnp.float32),
        "w_ih_t":  jax.random.uniform(ks[1], (hidden_size, hidden_size), jnp.float32, -s, s),
        "w_hh_t":  jax.random.uniform(ks[2], (hidden_size, hidden_size), jnp.float32, -s, s),
        "b_ih":    jax.random.uniform(ks[3], (1, hidden_size), jnp.float32, -s, s),
        "b_hh":    jax.random.uniform(ks[4], (1, hidden_size), jnp.float32, -s, s),
        "dec_w_t": jax.random.uniform(ks[5], (hidden_size, output_size), jnp.float32, -s, s),
        "dec_b":   jax.random.uniform(ks[6], (1, output_size), jnp.float32, -s, s),
    }


if __name__ == "__main__":
    input_size = 16    # vocab
    hidden_size = 32
    output_size = 16
    batch, seq = 2, 8

    key = jax.random.PRNGKey(0)
    k_tok, k_par = jax.random.split(key)
    tokens = jax.random.randint(k_tok, (batch, seq), 0, input_size, dtype=jnp.int32)
    params = init_params(k_par, input_size, hidden_size, output_size)
    hidden0 = jnp.zeros((1, batch, hidden_size), jnp.float32)    # init_hidden

    prep = prepare_params(params)                                # one-time
    logits, hidden_out = char_rnn_forward(tokens, hidden0, prep)
    jax.block_until_ready((logits, hidden_out))

    ref_logits, ref_hidden = char_rnn_reference(tokens, hidden0, params)
    assert logits.shape == (batch * seq, output_size)
    assert hidden_out.shape == (1, batch, hidden_size)
    # bf16 matmul operands -> looser tolerance vs. the pure-f32 reference.
    assert jnp.allclose(logits, ref_logits, rtol=5e-2, atol=5e-2)
    assert jnp.allclose(hidden_out, ref_hidden, rtol=5e-2, atol=5e-2)

    print("KERNEL_OK")
</pallas_src>

<mosaic_0001>
module attributes {stable_mosaic.version = 11 : i64} {
  func.func @rnn_recurrence_kernel(%arg0: memref<64x128xbf16, #tpu.memory_space<vmem>>, %arg1: memref<128x128xbf16, #tpu.memory_space<vmem>>, %arg2: memref<128x128xbf16, #tpu.memory_space<vmem>>, %arg3: memref<1x128xf32, #tpu.memory_space<vmem>>, %arg4: memref<8x128xf32, #tpu.memory_space<vmem>>, %arg5: memref<64x128xbf16, #tpu.memory_space<vmem>>, %arg6: memref<8x128xf32, #tpu.memory_space<vmem>>, %arg7: memref<64x128xf32, #tpu.memory_space<vmem>>, %arg8: memref<64x128xf32, #tpu.memory_space<vmem>>) attributes {dimension_semantics = [], scalar_prefetch = 0 : i64, scratch_operands = 2 : i64, tpu.core_type = #tpu.core_type<tc>} {
    %c0 = arith.constant 0 : index
    %c0_0 = arith.constant 0 : index
    %0 = vector.load %arg0[%c0, %c0_0] : memref<64x128xbf16, #tpu.memory_space<vmem>>, vector<64x128xbf16>
    %c0_1 = arith.constant 0 : index
    %c0_2 = arith.constant 0 : index
    %1 = vector.load %arg1[%c0_1, %c0_2] : memref<128x128xbf16, #tpu.memory_space<vmem>>, vector<128x128xbf16>
    %cst = arith.constant dense<0.000000e+00> : vector<64x128xf32>
    %2 = tpu.matmul %0, %1, %cst {dimension_numbers = #tpu.dot_dimension_numbers<[1], [0], [0], [1], [0, 0, 1, 1], [], []>} : vector<64x128xbf16>, vector<128x128xbf16>, vector<64x128xf32> -> vector<64x128xf32>
    %c0_3 = arith.constant 0 : index
    %c0_4 = arith.constant 0 : index
    %3 = vector.load %arg3[%c0_3, %c0_4] : memref<1x128xf32, #tpu.memory_space<vmem>>, vector<1x128xf32>
    %4 = vector.broadcast %3 : vector<1x128xf32> to vector<64x128xf32>
    %5 = arith.addf %2, %4 : vector<64x128xf32>
    %c0_5 = arith.constant 0 : index
    %c0_6 = arith.constant 0 : index
    %6 = vector.load %arg7[%c0_5, %c0_6] : memref<64x128xf32, #tpu.memory_space<vmem>>, vector<64x128xf32>
    tpu.vector_store %arg7[%c0_5, %c0_6], %5 {strides = array<i32>} : memref<64x128xf32, #tpu.memory_space<vmem>>, vector<64x128xf32>,
    %c0_7 = arith.constant 0 : index
    %c0_8 = arith.constant 0 : index
    %7 = vector.load %arg2[%c0_7, %c0_8] : memref<128x128xbf16, #tpu.memory_space<vmem>>, vector<128x128xbf16>
    %c0_9 = arith.constant 0 : index
    %c0_10 = arith.constant 0 : index
    %8 = vector.load %arg4[%c0_9, %c0_10] : memref<8x128xf32, #tpu.memory_space<vmem>>, vector<8x128xf32>
    %c0_11 = arith.constant 0 : index
    %c0_12 = arith.constant 0 : index
    %9 = vector.load %arg7[%c0_11, %c0_12] : memref<64x128xf32, #tpu.memory_space<vmem>>, vector<8x128xf32>
    %10 = arith.truncf %8 : vector<8x128xf32> to vector<8x128xbf16>
    %cst_13 = arith.constant dense<0.000000e+00> : vector<8x128xf32>
    %11 = tpu.matmul %10, %7, %cst_13 {dimension_numbers = #tpu.dot_dimension_numbers<[1], [0], [0], [1], [0, 0, 1, 1], [], []>} : vector<8x128xbf16>, vector<128x128xbf16>, vector<8x128xf32> -> vector<8x128xf32>
    %12 = arith.addf %9, %11 : vector<8x128xf32>
    %13 = math.tanh %12 : vector<8x128xf32>
    %c0_14 = arith.constant 0 : index
    %c0_15 = arith.constant 0 : index
    %14 = vector.load %arg8[%c0_14, %c0_15] : memref<64x128xf32, #tpu.memory_space<vmem>>, vector<8x128xf32>
    tpu.vector_store %arg8[%c0_14, %c0_15], %13 {strides = array<i32>} : memref<64x128xf32, #tpu.memory_space<vmem>>, vector<8x128xf32>,
    %c8 = arith.constant 8 : index
    %c0_16 = arith.constant 0 : index
    %15 = vector.load %arg7[%c8, %c0_16] : memref<64x128xf32, #tpu.memory_space<vmem>>, vector<8x128xf32>
    %16 = arith.truncf %13 : vector<8x128xf32> to vector<8x128xbf16>
    %cst_17 = arith.constant dense<0.000000e+00> : vector<8x128xf32>
    %17 = tpu.matmul %16, %7, %cst_17 {dimension_numbers = #tpu.dot_dimension_numbers<[1], [0], [0], [1], [0, 0, 1, 1], [], []>} : vector<8x128xbf16>, vector<128x128xbf16>, vector<8x128xf32> -> vector<8x128xf32>
    %18 = arith.addf %15, %17 : vector<8x128xf32>
    %19 = math.tanh %18 : vector<8x128xf32>
    %c8_18 = arith.constant 8 : index
    %c0_19 = arith.constant 0 : index
    %20 = vector.load %arg8[%c8_18, %c0_19] : memref<64x128xf32, #tpu.memory_space<vmem>>, vector<8x128xf32>
    tpu.vector_store %arg8[%c8_18, %c0_19], %19 {strides = array<i32>} : memref<64x128xf32, #tpu.memory_space<vmem>>, vector<8x128xf32>,
    %c16 = arith.constant 16 : index
    %c0_20 = arith.constant 0 : index
    %21 = vector.load %arg7[%c16, %c0_20] : memref<64x128xf32, #tpu.memory_space<vmem>>, vector<8x128xf32>
    %22 = arith.truncf %19 : vector<8x128xf32> to vector<8x128xbf16>
    %cst_21 = arith.constant dense<0.000000e+00> : vector<8x128xf32>
    %23 = tpu.matmul %22, %7, %cst_21 {dimension_numbers = #tpu.dot_dimension_numbers<[1], [0], [0], [1], [0, 0, 1, 1], [], []>} : vector<8x128xbf16>, vector<128x128xbf16>, vector<8x128xf32> -> vector<8x128xf32>
    %24 = arith.addf %21, %23 : vector<8x128xf32>
    %25 = math.tanh %24 : vector<8x128xf32>
    %c16_22 = arith.constant 16 : index
    %c0_23 = arith.constant 0 : index
    %26 = vector.load %arg8[%c16_22, %c0_23] : memref<64x128xf32, #tpu.memory_space<vmem>>, vector<8x128xf32>
    tpu.vector_store %arg8[%c16_22, %c0_23], %25 {strides = array<i32>} : memref<64x128xf32, #tpu.memory_space<vmem>>, vector<8x128xf32>,
    %c24 = arith.constant 24 : index
    %c0_24 = arith.constant 0 : index
    %27 = vector.load %arg7[%c24, %c0_24] : memref<64x128xf32, #tpu.memory_space<vmem>>, vector<8x128xf32>
    %28 = arith.truncf %25 : vector<8x128xf32> to vector<8x128xbf16>
    %cst_25 = arith.constant dense<0.000000e+00> : vector<8x128xf32>
    %29 = tpu.matmul %28, %7, %cst_25 {dimension_numbers = #tpu.dot_dimension_numbers<[1], [0], [0], [1], [0, 0, 1, 1], [], []>} : vector<8x128xbf16>, vector<128x128xbf16>, vector<8x128xf32> -> vector<8x128xf32>
    %30 = arith.addf %27, %29 : vector<8x128xf32>
    %31 = math.tanh %30 : vector<8x128xf32>
    %c24_26 = arith.constant 24 : index
    %c0_27 = arith.constant 0 : index
    %32 = vector.load %arg8[%c24_26, %c0_27] : memref<64x128xf32, #tpu.memory_space<vmem>>, vector<8x128xf32>
    tpu.vector_store %arg8[%c24_26, %c0_27], %31 {strides = array<i32>} : memref<64x128xf32, #tpu.memory_space<vmem>>, vector<8x128xf32>,
    %c32 = arith.constant 32 : index
    %c0_28 = arith.constant 0 : index
    %33 = vector.load %arg7[%c32, %c0_28] : memref<64x128xf32, #tpu.memory_space<vmem>>, vector<8x128xf32>
    %34 = arith.truncf %31 : vector<8x128xf32> to vector<8x128xbf16>
    %cst_29 = arith.constant dense<0.000000e+00> : vector<8x128xf32>
    %35 = tpu.matmul %34, %7, %cst_29 {dimension_numbers = #tpu.dot_dimension_numbers<[1], [0], [0], [1], [0, 0, 1, 1], [], []>} : vector<8x128xbf16>, vector<128x128xbf16>, vector<8x128xf32> -> vector<8x128xf32>
    %36 = arith.addf %33, %35 : vector<8x128xf32>
    %37 = math.tanh %36 : vector<8x128xf32>
    %c32_30 = arith.constant 32 : index
    %c0_31 = arith.constant 0 : index
    %38 = vector.load %arg8[%c32_30, %c0_31] : memref<64x128xf32, #tpu.memory_space<vmem>>, vector<8x128xf32>
    tpu.vector_store %arg8[%c32_30, %c0_31], %37 {strides = array<i32>} : memref<64x128xf32, #tpu.memory_space<vmem>>, vector<8x128xf32>,
    %c40 = arith.constant 40 : index
    %c0_32 = arith.constant 0 : index
    %39 = vector.load %arg7[%c40, %c0_32] : memref<64x128xf32, #tpu.memory_space<vmem>>, vector<8x128xf32>
    %40 = arith.truncf %37 : vector<8x128xf32> to vector<8x128xbf16>
    %cst_33 = arith.constant dense<0.000000e+00> : vector<8x128xf32>
    %41 = tpu.matmul %40, %7, %cst_33 {dimension_numbers = #tpu.dot_dimension_numbers<[1], [0], [0], [1], [0, 0, 1, 1], [], []>} : vector<8x128xbf16>, vector<128x128xbf16>, vector<8x128xf32> -> vector<8x128xf32>
    %42 = arith.addf %39, %41 : vector<8x128xf32>
    %43 = math.tanh %42 : vector<8x128xf32>
    %c40_34 = arith.constant 40 : index
    %c0_35 = arith.constant 0 : index
    %44 = vector.load %arg8[%c40_34, %c0_35] : memref<64x128xf32, #tpu.memory_space<vmem>>, vector<8x128xf32>
    tpu.vector_store %arg8[%c40_34, %c0_35], %43 {strides = array<i32>} : memref<64x128xf32, #tpu.memory_space<vmem>>, vector<8x128xf32>,
    %c48 = arith.constant 48 : index
    %c0_36 = arith.constant 0 : index
    %45 = vector.load %arg7[%c48, %c0_36] : memref<64x128xf32, #tpu.memory_space<vmem>>, vector<8x128xf32>
    %46 = arith.truncf %43 : vector<8x128xf32> to vector<8x128xbf16>
    %cst_37 = arith.constant dense<0.000000e+00> : vector<8x128xf32>
    %47 = tpu.matmul %46, %7, %cst_37 {dimension_numbers = #tpu.dot_dimension_numbers<[1], [0], [0], [1], [0, 0, 1, 1], [], []>} : vector<8x128xbf16>, vector<128x128xbf16>, vector<8x128xf32> -> vector<8x128xf32>
    %48 = arith.addf %45, %47 : vector<8x128xf32>
    %49 = math.tanh %48 : vector<8x128xf32>
    %c48_38 = arith.constant 48 : index
    %c0_39 = arith.constant 0 : index
    %50 = vector.load %arg8[%c48_38, %c0_39] : memref<64x128xf32, #tpu.memory_space<vmem>>, vector<8x128xf32>
    tpu.vector_store %arg8[%c48_38, %c0_39], %49 {strides = array<i32>} : memref<64x128xf32, #tpu.memory_space<vmem>>, vector<8x128xf32>,
    %c56 = arith.constant 56 : index
    %c0_40 = arith.constant 0 : index
    %51 = vector.load %arg7[%c56, %c0_40] : memref<64x128xf32, #tpu.memory_space<vmem>>, vector<8x128xf32>
    %52 = arith.truncf %49 : vector<8x128xf32> to vector<8x128xbf16>
    %cst_41 = arith.constant dense<0.000000e+00> : vector<8x128xf32>
    %53 = tpu.matmul %52, %7, %cst_41 {dimension_numbers = #tpu.dot_dimension_numbers<[1], [0], [0], [1], [0, 0, 1, 1], [], []>} : vector<8x128xbf16>, vector<128x128xbf16>, vector<8x128xf32> -> vector<8x128xf32>
    %54 = arith.addf %51, %53 : vector<8x128xf32>
    %55 = math.tanh %54 : vector<8x128xf32>
    %c56_42 = arith.constant 56 : index
    %c0_43 = arith.constant 0 : index
    %56 = vector.load %arg8[%c56_42, %c0_43] : memref<64x128xf32, #tpu.memory_space<vmem>>, vector<8x128xf32>
    tpu.vector_store %arg8[%c56_42, %c0_43], %55 {strides = array<i32>} : memref<64x128xf32, #tpu.memory_space<vmem>>, vector<8x128xf32>,
    %c0_44 = arith.constant 0 : index
    %c0_45 = arith.constant 0 : index
    %57 = vector.load %arg6[%c0_44, %c0_45] : memref<8x128xf32, #tpu.memory_space<vmem>>, vector<8x128xf32>
    tpu.vector_store %arg6[%c0_44, %c0_45], %55 {strides = array<i32>} : memref<8x128xf32, #tpu.memory_space<vmem>>, vector<8x128xf32>,
    %c0_46 = arith.constant 0 : index
    %c0_47 = arith.constant 0 : index
    %58 = vector.load %arg8[%c0_46, %c0_47] : memref<64x128xf32, #tpu.memory_space<vmem>>, vector<64x128xf32>
    %59 = vector.shape_cast %58 : vector<64x128xf32> to vector<8x8x128xf32>
    %60 = tpu.transpose %59, [1, 0, 2] : vector<8x8x128xf32> -> vector<8x8x128xf32>
    %61 = vector.shape_cast %60 : vector<8x8x128xf32> to vector<64x128xf32>
    %62 = arith.truncf %61 : vector<64x128xf32> to vector<64x128xbf16>
    %c0_48 = arith.constant 0 : index
    %c0_49 = arith.constant 0 : index
    %63 = vector.load %arg5[%c0_48, %c0_49] : memref<64x128xbf16, #tpu.memory_space<vmem>>, vector<64x128xbf16>
    tpu.vector_store %arg5[%c0_48, %c0_49], %62 {strides = array<i32>} : memref<64x128xbf16, #tpu.memory_space<vmem>>, vector<64x128xbf16>,
    return
  }
}

</mosaic_0001>

<bundles_post_ra>
// kernel: tpu_custom_call.1
= control target key start
LH: loop header
LB: loop body
LE: loop exit
PB: predicated region body
PF: predicated region fallthrough
CT: control target
= control target key end

     0   :  { %12 = vsyncpa [#allocation5], 0  ;;  %s1753_s0 = inlined_call_operand.hbm [shape: bf16[64,128], index: 0, kind: input, shape index: {}]   ;;  %s1754_s1 = inlined_call_operand.hbm [shape: bf16[128,128], index: 1, kind: input, shape index: {}]   ;;  %s1755_s2 = inlined_call_operand.hbm [shape: bf16[128,128], index: 2, kind: input, shape index: {}]   ;;  %s1756_s3 = inlined_call_operand.vmem [shape: f32[1,128], index: 3, kind: input, shape index: {}]   ;;  %s1757_s4 = inlined_call_operand.vmem [shape: f32[8,128], index: 4, kind: input, shape index: {}]   ;;  %s1758_s5 = inlined_call_operand.hbm [shape: bf16[64,128], index: 5, kind: output, shape index: {0}]   ;;  %s1759_s6 = inlined_call_operand.hbm [shape: f32[8,128], index: 6, kind: output, shape index: {1}]  }
   0x1   :  { %13 = vsyncpa [#allocation8], 0 }
   0x2   :  { %14 = vsyncpa [#allocation6], 0 }
   0x3   :  { %15 = vsyncpa [#allocation12], 0  ;;  %s1377_s21 = smov [#allocation7]   ;;  %s1378_s23 = smov [#allocation4]  }
   0x4   :  { %s33_s22 = sshll.u32 %s1377_s21, 4  ;;  %s21_s24 = sshll.u32 %s1378_s23, 4  ;;  %s34_s22 = int_to_ptr.vmem [resolvable:$true] %s33_s22  ;;  %s1423_s24 = int_to_ptr.vmem [resolvable:$true] %s21_s24 }
   0x5   :  { %s1259_s27 = scalar_lea.hbm %s1754_s1, 1024 }
   0x6   :  { %p1260_p0 = scmp.ne.s32.totalorder %s1754_s1, %s1259_s27  ;;  %p1263_p1 = scmp.lt.u32.totalorder %s1259_s27, %s1754_s1 }
   0x8   :  { %p1265_p2 = pnand %p1263_p1, %p1260_p0 }
   0xa   :  { %1268 = shalt.err (!%p1265_p2)
}
   0xb   :  { %s1269_s8 = scalar_lea.vmem %s34_s22, 1024  ;;  %p1274_p4 = scmp.lt.s32.totalorder %s34_s22, %s34_s22 }
   0xc   :  { %p1270_p3 = scmp.ne.s32.totalorder %s34_s22, %s1269_s8  ;;  %p1275_p5 = scmp.lt.s32.totalorder %s1269_s8, %s1269_s8 }
   0xe   :  { %p1276_p6 = por %p1275_p5, %p1274_p4 }
  0x10   :  { %p1277_p7 = pnand %p1276_p6, %p1270_p3 }
  0x12   :  { %1280 = shalt.err (!%p1277_p7)
}
  0x13   :  { %s1379_s9 = smov 64   ;;  %s1380_s10 = smov 4  }
  0x14   :  { %39 = dma.hbm_to_vmem [thread:$0]  %s1754_s1, 1024, %s34_s22, [#allocation8], %s1379_s9, %s1379_s9, %s1380_s10  }
  0x15   :  { %s1281_s15 = scalar_lea.hbm %s1753_s0, 512 }
  0x16   :  { %p1282_p8 = scmp.ne.s32.totalorder %s1753_s0, %s1281_s15  ;;  %p1285_p9 = scmp.lt.u32.totalorder %s1281_s15, %s1753_s0 }
  0x18   :  { %p1287_p10 = pnand %p1285_p9, %p1282_p8 }
  0x1a   :  { %1290 = shalt.err (!%p1287_p10)
}
  0x1b   :  { %s1291_s20 = scalar_lea.vmem %s1423_s24, 512  ;;  %p1296_p12 = scmp.lt.s32.totalorder %s1423_s24, %s1423_s24 }
  0x1c   :  { %p1292_p11 = scmp.ne.s32.totalorder %s1423_s24, %s1291_s20  ;;  %p1297_p13 = scmp.lt.s32.totalorder %s1291_s20, %s1291_s20 }
  0x1e   :  { %p1298_p0 = por %p1297_p13, %p1296_p12 }
  0x20   :  { %p1299_p1 = pnand %p1298_p0, %p1292_p11 }
  0x22   :  { %1302 = shalt.err (!%p1299_p1)
}
  0x23   :  { %27 = dma.hbm_to_vmem [thread:$0]  %s1753_s0, 512, %s1423_s24, [#allocation5], %s1379_s9, %s1379_s9, %s1380_s10  }
  0x24   :  { %s1381_s22 = smov [#allocation9]   ;;  %s1303_s27 = scalar_lea.hbm %s1755_s2, 1024 }
  0x25   :  { %s45_s23 = sshll.u32 %s1381_s22, 4  ;;  %p1304_p2 = scmp.ne.s32.totalorder %s1755_s2, %s1303_s27  ;;  %s46_s23 = int_to_ptr.vmem [resolvable:$true] %s45_s23 }
  0x26   :  { %p1307_p3 = scmp.lt.u32.totalorder %s1303_s27, %s1755_s2 }
  0x28   :  { %p1309_p4 = pnand %p1307_p3, %p1304_p2 }
  0x2a   :  { %1312 = shalt.err (!%p1309_p4)
}
  0x2b   :  { %s1313_s8 = scalar_lea.vmem %s46_s23, 1024  ;;  %p1318_p6 = scmp.lt.s32.totalorder %s46_s23, %s46_s23 }
  0x2c   :  { %p1314_p5 = scmp.ne.s32.totalorder %s46_s23, %s1313_s8  ;;  %p1319_p7 = scmp.lt.s32.totalorder %s1313_s8, %s1313_s8 }
  0x2e   :  { %p1320_p8 = por %p1319_p7, %p1318_p6 }
  0x30   :  { %p1321_p9 = pnand %p1320_p8, %p1314_p5 }
  0x32   :  { %1324 = shalt.err (!%p1321_p9)
}
  0x33   :  { %51 = dma.hbm_to_vmem [thread:$0]  %s1755_s2, 1024, %s46_s23, [#allocation8], %s1379_s9, %s1379_s9, %s1380_s10  }
  0x34   :  { %1369 = dma.done.wait [#allocation5], 512  }
  0x35   :  { %1370 = vsyncadd [#allocation5], 4294966784 }
  0x36   :  { %1371 = dma.done.wait [#allocation8], 2048  }
  0x37   :  { %1372 = vsyncadd [#allocation8], 4294965248  ;;  %v1382_v0 = vmov 0.0   ;;  %vm1383_vm0 = vmmov 0   ;;  %v1223_v1 = vld [vmem:[#allocation7] sm:$0xff]   ;;  %v1225_v3 = vld [vmem:[#allocation7 + $0x8] sm:$0xff]  }
  0x38   :  { %1052 = vmatprep.subr.bf16.mxu1 %v1382_v0  ;;  %1068 = vmatprep.mubr.msk.bf16.mxu1 %vm1383_vm0, %v1382_v0  ;;  %v1478_v2 = vld [vmem:[#allocation9] sm:$0xff]   ;;  %v1481_v4 = vld [vmem:[#allocation9 + $0x8] sm:$0xff]   ;;  %v1227_v5 = vld [vmem:[#allocation7 + $0x10] sm:$0xff]   ;;  %v1384_v62 = vmov 1983009808  }
  0x39   :  { %1028 = vmatprep.subr.bf16.mxu0 %v1223_v1  ;;  %1053 = vmatpush3.bf16.msra.mxu1 %v1478_v2  ;;  %v1485_v6 = vld [vmem:[#allocation9 + $0x10] sm:$0xff]   ;;  %v1229_v7 = vld [vmem:[#allocation7 + $0x18] sm:$0xff]   ;;  %v1231_v9 = vld [vmem:[#allocation7 + $0x20] sm:$0xff]   ;;  %v679_v63 = vunpack.c.l.s4 %v1384_v62 }
  0x3a   :  { %1029 = vmatpush3.bf16.msra.mxu0 %v1223_v1  ;;  %1054 = vmatprep.subr.bf16.mxu1 %v1382_v0  ;;  %v1489_v8 = vld [vmem:[#allocation9 + $0x18] sm:$0xff]   ;;  %v1492_v10 = vld [vmem:[#allocation9 + $0x20] sm:$0xff]   ;;  %v1233_v11 = vld [vmem:[#allocation7 + $0x28] sm:$0xff]   ;;  %v681_v1 = vlaneseq }
  0x3b   :  { %1030 = vmatprep.subr.bf16.mxu0 %v1225_v3  ;;  %v1239_v12 = vld [vmem:[#allocation4] sm:$0xff]   ;;  %v1497_v13 = vld [vmem:[#allocation9 + $0x28] sm:$0xff]   ;;  %v1235_v14 = vld [vmem:[#allocation7 + $0x30] sm:$0xff]  }
  0x3c   :  { %1044 = vmatprep.mubr.bf16.mxu0 %v1239_v12  ;;  %v1501_v15 = vld [vmem:[#allocation9 + $0x30] sm:$0xff]   ;;  %v1237_v16 = vld [vmem:[#allocation7 + $0x38] sm:$0xff]   ;;  %v258_v18 = vld [vmem:[%s1757_s4] sm:$0xff] }
  0x3d   :  { %1055 = vmatpush3.bf16.msra.mxu1 %v1481_v4  ;;  %v1505_v17 = vld [vmem:[#allocation9 + $0x38] sm:$0xff]   ;;  %v1240_v19 = vld [vmem:[#allocation4 + $0x8] sm:$0xff]   ;;  %v260_v20 = vpack.c.bf16 %v258_v18, %v258_v18  ;;  %v1241_v21 = vld [vmem:[#allocation4 + $0x10] sm:$0xff]  }
  0x3e   :  { %1031 = vmatpush3.bf16.msra.mxu0 %v1225_v3  ;;  %1056 = vmatprep.subr.bf16.mxu1 %v1382_v0  ;;  %v1242_v22 = vld [vmem:[#allocation4 + $0x18] sm:$0xff]   ;;  %v1553_v23 = vld [vmem:[%s1756_s3] ss:$0 sm:$0xff]  ;;  %v680_v3 = vunpack.c.0.s8 %v679_v63  ;;  %s1386_s3 = smov [#allocation11]  }
  0x3f   :  { %1032 = vmatprep.subr.bf16.mxu0 %v1227_v5  ;;  %s870_s13 = sshll.u32 %s1386_s3, 4  ;;  %s871_s13 = int_to_ptr.vmem [resolvable:$true] %s870_s13 }
  0x40   :  { %s1325_s14 = scalar_lea.vmem %s871_s13, 128  ;;  %p1330_p11 = scmp.lt.s32.totalorder %s871_s13, %s871_s13 }
  0x41   :  { %1057 = vmatpush3.bf16.msra.mxu1 %v1485_v6  ;;  %p1326_p10 = scmp.ne.s32.totalorder %s871_s13, %s1325_s14  ;;  %p1331_p12 = scmp.lt.s32.totalorder %s1325_s14, %s1325_s14 }
  0x42   :  { %1033 = vmatpush3.bf16.msra.mxu0 %v1227_v5  ;;  %1058 = vmatprep.subr.bf16.mxu1 %v1382_v0  ;;  %v1632_v5 = vshrl.u32 %v681_v1, 7 }
  0x43   :  { %1034 = vmatprep.subr.bf16.mxu0 %v1229_v7  ;;  %p1332_p13 = por %p1331_p12, %p1330_p11 }
  0x45   :  { %1059 = vmatpush3.bf16.msra.mxu1 %v1489_v8  ;;  %p1333_p0 = pnand %p1332_p13, %p1326_p10 }
  0x46   :  { %1035 = vmatpush3.bf16.msra.mxu0 %v1229_v7  ;;  %1060 = vmatprep.subr.bf16.mxu1 %v1382_v0 }
  0x47   :  { %1036 = vmatprep.subr.bf16.mxu0 %v1231_v9 }
  0x49   :  { %1061 = vmatpush3.bf16.msra.mxu1 %v1492_v10 }
  0x4a   :  { %1037 = vmatpush3.bf16.msra.mxu0 %v1231_v9  ;;  %1062 = vmatprep.subr.bf16.mxu1 %v1382_v0 }
  0x4b   :  { %1038 = vmatprep.subr.bf16.mxu0 %v1233_v11 }
  0x4d   :  { %1063 = vmatpush3.bf16.msra.mxu1 %v1497_v13 }
  0x4e   :  { %1039 = vmatpush3.bf16.msra.mxu0 %v1233_v11  ;;  %1064 = vmatprep.subr.bf16.mxu1 %v1382_v0  ;;  %v1637_v11 = vsub.s32 %v680_v3, %v1632_v5 }
  0x4f   :  { %1040 = vmatprep.subr.bf16.mxu0 %v1235_v14 }
  0x51   :  { %1065 = vmatpush3.bf16.msra.mxu1 %v1501_v15 }
  0x52   :  { %1041 = vmatpush3.bf16.msra.mxu0 %v1235_v14  ;;  %1066 = vmatprep.subr.bf16.mxu1 %v1382_v0 }
  0x53   :  { %1042 = vmatprep.subr.bf16.mxu0 %v1237_v16 }
  0x55   :  { %1067 = vmatpush3.bf16.msra.mxu1 %v1505_v17 }
  0x56   :  { %1043 = vmatpush3.bf16.msra.mxu0 %v1237_v16  ;;  %1092 = vmatprep.subr.bf16.mxu1 %v1382_v0 }
  0x57   :  { %1072 = vmatprep.subr.bf16.mxu0 %v1382_v0 }
  0x58   :  { %1069 = vmatmul.mubr.bf16.vlgmr.msra.gmra.mrb[0].mxu1 %v260_v20 }
  0x59   :  { %1045 = vmatmul.mubr.bf16.vlgmr.msra.gmra.mrb[0].mxu0 %v1240_v19  ;;  %1093 = vmatpush3.bf16.msra.mxu1 %v1478_v2 }
  0x5a   :  { %1073 = vmatpush3.bf16.msra.mxu0 %v1478_v2  ;;  %1094 = vmatprep.subr.bf16.mxu1 %v1382_v0 }
  0x5b   :  { %1074 = vmatprep.subr.bf16.mxu0 %v1382_v0  ;;  %1108 = vmatprep.mubr.msk.bf16.mxu1 %vm1383_vm0, %v1382_v0 }
  0x5c   :  { %1048 = vmatprep.mubr.bf16.mxu0 %v1241_v21 }
  0x5d   :  { %1095 = vmatpush3.bf16.msra.mxu1 %v1481_v4 }
  0x5e   :  { %1075 = vmatpush3.bf16.msra.mxu0 %v1481_v4  ;;  %1096 = vmatprep.subr.bf16.mxu1 %v1382_v0 }
  0x5f   :  { %1076 = vmatprep.subr.bf16.mxu0 %v1382_v0 }
  0x61   :  { %1097 = vmatpush3.bf16.msra.mxu1 %v1485_v6  ;;  %1049 = vmatmul.mubr.bf16.gmra.mrb[4].mxu0 %v1242_v22 }
  0x62   :  { %1077 = vmatpush3.bf16.msra.mxu0 %v1485_v6  ;;  %1098 = vmatprep.subr.bf16.mxu1 %v1382_v0 }
  0x63   :  { %1078 = vmatprep.subr.bf16.mxu0 %v1382_v0  ;;  %1088 = vmatprep.mubr.msk.bf16.mxu0 %vm1383_vm0, %v1382_v0 }
  0x65   :  { %1099 = vmatpush3.bf16.msra.mxu1 %v1489_v8 }
  0x66   :  { %1079 = vmatpush3.bf16.msra.mxu0 %v1489_v8  ;;  %1100 = vmatprep.subr.bf16.mxu1 %v1382_v0 }
  0x67   :  { %1080 = vmatprep.subr.bf16.mxu0 %v1382_v0 }
  0x69   :  { %1101 = vmatpush3.bf16.msra.mxu1 %v1492_v10 }
  0x6a   :  { %1081 = vmatpush3.bf16.msra.mxu0 %v1492_v10  ;;  %1102 = vmatprep.subr.bf16.mxu1 %v1382_v0 }
  0x6b   :  { %1082 = vmatprep.subr.bf16.mxu0 %v1382_v0 }
  0x6d   :  { %1103 = vmatpush3.bf16.msra.mxu1 %v1497_v13 }
  0x6e   :  { %1083 = vmatpush3.bf16.msra.mxu0 %v1497_v13  ;;  %1104 = vmatprep.subr.bf16.mxu1 %v1382_v0 }
  0x6f   :  { %1084 = vmatprep.subr.bf16.mxu0 %v1382_v0 }
  0x71   :  { %1105 = vmatpush3.bf16.msra.mxu1 %v1501_v15 }
  0x72   :  { %1085 = vmatpush3.bf16.msra.mxu0 %v1501_v15  ;;  %1106 = vmatprep.subr.bf16.mxu1 %v1382_v0 }
  0x73   :  { %1086 = vmatprep.subr.bf16.mxu0 %v1382_v0 }
  0x75   :  { %1107 = vmatpush3.bf16.msra.mxu1 %v1505_v17 }
  0x76   :  { %1087 = vmatpush3.bf16.msra.mxu0 %v1505_v17  ;;  %1132 = vmatprep.subr.bf16.mxu1 %v1382_v0 }
  0x77   :  { %1112 = vmatprep.subr.bf16.mxu0 %v1382_v0 }
 0x12b   :  { %v343_v25 = vpop.f32.mrb[0].mxu1 }
 0x12c   :  { %v1046_v24 = vpop.f32.mrb[0].mxu0  ;;  %v1070_v27 = vpop.f32.mrb[1].mxu1 }
 0x12d   :  { %v203_v26 = vpop.f32.mrb[1].mxu0  ;;  %v346_v30 = vpop.f32.mrb[2].mxu1  ;;  %v212_v48 = vadd.f32 %v1046_v24, %v1553_v23 }
 0x12e   :  { %v204_v28 = vadd.f32 %v1553_v23, %v203_v26  ;;  %v1556_v29 = vpop.f32.mrb[2].mxu0  ;;  %v1071_v32 = vpop.f32.mrb[3].mxu1 }
 0x12f   :  { %v206_v31 = vpop.f32.mrb[3].mxu0  ;;  %v215_v56 = vadd.f32 %v1556_v29, %v1553_v23 }
 0x130   :  { %v349_v33 = vadd.f32 %v343_v25, %v204_v28  ;;  %v207_v40 = vadd.f32 %v1553_v23, %v206_v31 }
 0x132   :  { %1243 = vtanh.f32 %v349_v33 }
 0x134   :  { %v1580_v36 = vpop.f32.mrb[4].mxu0 }
 0x135   :  { %v1582_v37 = vpop.f32.mrb[5].mxu0 }
 0x136   :  { %v1584_v38 = vpop.f32.mrb[6].mxu0  ;;  %v220_v28 = vadd.f32 %v1553_v23, %v1582_v37 }
 0x137   :  { %v1586_v39 = vpop.f32.mrb[7].mxu0 }
 0x13c   :  { %v1558_v34 = vpop.eup %1243 }
 0x13d   :  { %v353_v35 = vpack.c.bf16 %v1558_v34, %v1558_v34 }
 0x13f   :  { %1089 = vmatmul.mubr.bf16.vlgmr.msra.gmra.mrb[8].mxu0 %v353_v35 }
 0x140   :  { %1113 = vmatpush3.bf16.msra.mxu0 %v1478_v2  ;;  %1128 = vmatprep.mubr.msk.bf16.mxu0 %vm1383_vm0, %v1382_v0 }
 0x141   :  { %1114 = vmatprep.subr.bf16.mxu0 %v1382_v0 }
 0x144   :  { %1115 = vmatpush3.bf16.msra.mxu0 %v1481_v4 }
 0x145   :  { %1116 = vmatprep.subr.bf16.mxu0 %v1382_v0 }
 0x148   :  { %1117 = vmatpush3.bf16.msra.mxu0 %v1485_v6 }
 0x149   :  { %1118 = vmatprep.subr.bf16.mxu0 %v1382_v0 }
 0x14c   :  { %1119 = vmatpush3.bf16.msra.mxu0 %v1489_v8 }
 0x14d   :  { %1120 = vmatprep.subr.bf16.mxu0 %v1382_v0 }
 0x150   :  { %1121 = vmatpush3.bf16.msra.mxu0 %v1492_v10 }
 0x151   :  { %1122 = vmatprep.subr.bf16.mxu0 %v1382_v0 }
 0x154   :  { %1123 = vmatpush3.bf16.msra.mxu0 %v1497_v13 }
 0x155   :  { %1124 = vmatprep.subr.bf16.mxu0 %v1382_v0 }
 0x158   :  { %1125 = vmatpush3.bf16.msra.mxu0 %v1501_v15 }
 0x159   :  { %1126 = vmatprep.subr.bf16.mxu0 %v1382_v0 }
 0x15c   :  { %1127 = vmatpush3.bf16.msra.mxu0 %v1505_v17 }
 0x15d   :  { %1152 = vmatprep.subr.bf16.mxu0 %v1382_v0 }
 0x212   :  { %v388_v41 = vpop.f32.mrb[8].mxu0 }
 0x213   :  { %v394_v42 = vadd.f32 %v388_v41, %v207_v40  ;;  %v1090_v43 = vpop.f32.mrb[9].mxu0 }
 0x214   :  { %v391_v44 = vpop.f32.mrb[10].mxu0 }
 0x215   :  { %1245 = vtanh.f32 %v394_v42  ;;  %v1091_v45 = vpop.f32.mrb[11].mxu0 }
 0x216   :  { %v231_v45 = vadd.f32 %v1584_v38, %v1553_v23 }
 0x21f   :  { %v1589_v46 = vpop.eup %1245 }
 0x220   :  { %v398_v47 = vpack.c.bf16 %v1589_v46, %v1589_v46 }
 0x222   :  { %1109 = vmatmul.mubr.bf16.vlgmr.msra.gmra.mrb[4].mxu1 %v398_v47 }
 0x223   :  { %1133 = vmatpush3.bf16.msra.mxu1 %v1478_v2  ;;  %1148 = vmatprep.mubr.msk.bf16.mxu1 %vm1383_vm0, %v1382_v0 }
 0x224   :  { %1134 = vmatprep.subr.bf16.mxu1 %v1382_v0 }
 0x227   :  { %1135 = vmatpush3.bf16.msra.mxu1 %v1481_v4 }
 0x228   :  { %1136 = vmatprep.subr.bf16.mxu1 %v1382_v0 }
 0x22b   :  { %1137 = vmatpush3.bf16.msra.mxu1 %v1485_v6 }
 0x22c   :  { %1138 = vmatprep.subr.bf16.mxu1 %v1382_v0 }
 0x22f   :  { %1139 = vmatpush3.bf16.msra.mxu1 %v1489_v8 }
 0x230   :  { %1140 = vmatprep.subr.bf16.mxu1 %v1382_v0 }
 0x233   :  { %1141 = vmatpush3.bf16.msra.mxu1 %v1492_v10 }
 0x234   :  { %1142 = vmatprep.subr.bf16.mxu1 %v1382_v0 }
 0x237   :  { %1143 = vmatpush3.bf16.msra.mxu1 %v1497_v13 }
 0x238   :  { %1144 = vmatprep.subr.bf16.mxu1 %v1382_v0 }
 0x23b   :  { %1145 = vmatpush3.bf16.msra.mxu1 %v1501_v15 }
 0x23c   :  { %1146 = vmatprep.subr.bf16.mxu1 %v1382_v0 }
 0x23f   :  { %1147 = vmatpush3.bf16.msra.mxu1 %v1505_v17 }
 0x240   :  { %1172 = vmatprep.subr.bf16.mxu1 %v1382_v0 }
 0x2f5   :  { %v433_v49 = vpop.f32.mrb[4].mxu1 }
 0x2f6   :  { %v439_v50 = vadd.f32 %v433_v49, %v212_v48  ;;  %v1110_v51 = vpop.f32.mrb[5].mxu1 }
 0x2f7   :  { %v436_v52 = vpop.f32.mrb[6].mxu1  ;;  %v1385_v51 = vmov 1934713408  }
 0x2f8   :  { %1247 = vtanh.f32 %v439_v50  ;;  %v1111_v53 = vpop.f32.mrb[7].mxu1 }
 0x302   :  { %v1248_v54 = vpop.eup %1247 }
 0x303   :  { %v443_v55 = vpack.c.bf16 %v1248_v54, %v1248_v54  ;;  %v676_v7 = vcombine.low %v1558_v34, %v1248_v54  ;;  %v677_v9 = vcombine.high %v1558_v34, %v1248_v54 }
 0x305   :  { %1129 = vmatmul.mubr.bf16.vlgmr.msra.gmra.mrb[12].mxu0 %v443_v55  ;;  %v1642_v19 = vrot.slane %v676_v7, %v1637_v11  ;;  %v1645_v20 = vrot.slane %v677_v9, %v1637_v11 }
 0x306   :  { %1153 = vmatpush3.bf16.msra.mxu0 %v1478_v2  ;;  %1168 = vmatprep.mubr.msk.bf16.mxu0 %vm1383_vm0, %v1382_v0 }
 0x307   :  { %1154 = vmatprep.subr.bf16.mxu0 %v1382_v0 }
 0x30a   :  { %1155 = vmatpush3.bf16.msra.mxu0 %v1481_v4 }
 0x30b   :  { %1156 = vmatprep.subr.bf16.mxu0 %v1382_v0 }
 0x30e   :  { %1157 = vmatpush3.bf16.msra.mxu0 %v1485_v6 }
 0x30f   :  { %1158 = vmatprep.subr.bf16.mxu0 %v1382_v0 }
 0x312   :  { %1159 = vmatpush3.bf16.msra.mxu0 %v1489_v8 }
 0x313   :  { %1160 = vmatprep.subr.bf16.mxu0 %v1382_v0 }
 0x316   :  { %1161 = vmatpush3.bf16.msra.mxu0 %v1492_v10 }
 0x317   :  { %1162 = vmatprep.subr.bf16.mxu0 %v1382_v0 }
 0x31a   :  { %1163 = vmatpush3.bf16.msra.mxu0 %v1497_v13 }
 0x31b   :  { %1164 = vmatprep.subr.bf16.mxu0 %v1382_v0 }
 0x31e   :  { %1165 = vmatpush3.bf16.msra.mxu0 %v1501_v15 }
 0x31f   :  { %1166 = vmatprep.subr.bf16.mxu0 %v1382_v0 }
 0x322   :  { %1167 = vmatpush3.bf16.msra.mxu0 %v1505_v17 }
 0x323   :  { %1192 = vmatprep.subr.bf16.mxu0 %v1382_v0 }
 0x3d8   :  { %v478_v57 = vpop.f32.mrb[12].mxu0 }
 0x3d9   :  { %v484_v58 = vadd.f32 %v478_v57, %v215_v56  ;;  %v1130_v59 = vpop.f32.mrb[13].mxu0 }
 0x3da   :  { %v481_v60 = vpop.f32.mrb[14].mxu0 }
 0x3db   :  { %1249 = vtanh.f32 %v484_v58  ;;  %v1131_v61 = vpop.f32.mrb[15].mxu0 }
 0x3e5   :  { %v1250_v12 = vpop.eup %1249 }
 0x3e6   :  { %v488_v14 = vpack.c.bf16 %v1250_v12, %v1250_v12  ;;  %v692_v16 = vcombine.low %v1589_v46, %v1250_v12  ;;  %v693_v18 = vcombine.high %v1589_v46, %v1250_v12 }
 0x3e8   :  { %1149 = vmatmul.mubr.bf16.vlgmr.msra.gmra.mrb[8].mxu1 %v488_v14  ;;  %v1648_v21 = vrot.slane %v692_v16, %v1637_v11  ;;  %v1651_v22 = vrot.slane %v693_v18, %v1637_v11 }
 0x3e9   :  { %1173 = vmatpush3.bf16.msra.mxu1 %v1478_v2  ;;  %1188 = vmatprep.mubr.msk.bf16.mxu1 %vm1383_vm0, %v1382_v0 }
 0x3ea   :  { %1174 = vmatprep.subr.bf16.mxu1 %v1382_v0  ;;  %v740_v24 = vcombine.low %v1642_v19, %v1648_v21  ;;  %v741_v25 = vcombine.high %v1642_v19, %v1648_v21  ;;  %v756_v26 = vcombine.low %v1645_v20, %v1651_v22  ;;  %v757_v27 = vcombine.high %v1645_v20, %v1651_v22 }
 0x3ed   :  { %1175 = vmatpush3.bf16.msra.mxu1 %v1481_v4 }
 0x3ee   :  { %1176 = vmatprep.subr.bf16.mxu1 %v1382_v0 }
 0x3f1   :  { %1177 = vmatpush3.bf16.msra.mxu1 %v1485_v6 }
 0x3f2   :  { %1178 = vmatprep.subr.bf16.mxu1 %v1382_v0 }
 0x3f5   :  { %1179 = vmatpush3.bf16.msra.mxu1 %v1489_v8 }
 0x3f6   :  { %1180 = vmatprep.subr.bf16.mxu1 %v1382_v0 }
 0x3f9   :  { %1181 = vmatpush3.bf16.msra.mxu1 %v1492_v10 }
 0x3fa   :  { %1182 = vmatprep.subr.bf16.mxu1 %v1382_v0 }
 0x3fd   :  { %1183 = vmatpush3.bf16.msra.mxu1 %v1497_v13 }
 0x3fe   :  { %1184 = vmatprep.subr.bf16.mxu1 %v1382_v0 }
 0x401   :  { %1185 = vmatpush3.bf16.msra.mxu1 %v1501_v15 }
 0x402   :  { %1186 = vmatprep.subr.bf16.mxu1 %v1382_v0 }
 0x405   :  { %1187 = vmatpush3.bf16.msra.mxu1 %v1505_v17 }
 0x4bb   :  { %v523_v29 = vpop.f32.mrb[8].mxu1 }
 0x4bc   :  { %v529_v30 = vadd.f32 %v523_v29, %v220_v28  ;;  %v1150_v31 = vpop.f32.mrb[9].mxu1 }
 0x4bd   :  { %v526_v32 = vpop.f32.mrb[10].mxu1 }
 0x4be   :  { %1251 = vtanh.f32 %v529_v30  ;;  %v1151_v33 = vpop.f32.mrb[11].mxu1 }
 0x4c8   :  { %v1680_v34 = vpop.eup %1251 }
 0x4c9   :  { %v533_v35 = vpack.c.bf16 %v1680_v34, %v1680_v34 }
 0x4cb   :  { %1169 = vmatmul.mubr.bf16.vlgmr.msra.gmra.mrb[16].mxu0 %v533_v35 }
 0x4cc   :  { %1193 = vmatpush3.bf16.msra.mxu0 %v1478_v2  ;;  %1208 = vmatprep.mubr.msk.bf16.mxu0 %vm1383_vm0, %v1382_v0  ;;  %v223_v2 = vadd.f32 %v1553_v23, %v1586_v39 }
 0x4cd   :  { %1194 = vmatprep.subr.bf16.mxu0 %v1382_v0 }
 0x4d0   :  { %1195 = vmatpush3.bf16.msra.mxu0 %v1481_v4 }
 0x4d1   :  { %1196 = vmatprep.subr.bf16.mxu0 %v1382_v0 }
 0x4d4   :  { %1197 = vmatpush3.bf16.msra.mxu0 %v1485_v6 }
 0x4d5   :  { %1198 = vmatprep.subr.bf16.mxu0 %v1382_v0 }
 0x4d8   :  { %1199 = vmatpush3.bf16.msra.mxu0 %v1489_v8 }
 0x4d9   :  { %1200 = vmatprep.subr.bf16.mxu0 %v1382_v0 }
 0x4dc   :  { %1201 = vmatpush3.bf16.msra.mxu0 %v1492_v10 }
 0x4dd   :  { %1202 = vmatprep.subr.bf16.mxu0 %v1382_v0 }
 0x4e0   :  { %1203 = vmatpush3.bf16.msra.mxu0 %v1497_v13  ;;  %v228_v13 = vadd.f32 %v1580_v36, %v1553_v23  ;;  %v743_v36 = vunpack.c.l.s4 %v1385_v51 }
 0x4e1   :  { %1204 = vmatprep.subr.bf16.mxu0 %v1382_v0 }
 0x4e2   :  { %v744_v52 = vunpack.c.0.s8 %v743_v36 }
 0x4e4   :  { %1205 = vmatpush3.bf16.msra.mxu0 %v1501_v15  ;;  %v747_v38 = vsub.s32 %v744_v52, %v1632_v5 }
 0x4e5   :  { %1206 = vmatprep.subr.bf16.mxu0 %v1382_v0 }
 0x4e8   :  { %1207 = vmatpush3.bf16.msra.mxu0 %v1505_v17 }
 0x59e   :  { %v568_v4 = vpop.f32.mrb[16].mxu0 }
 0x59f   :  { %v574_v6 = vadd.f32 %v568_v4, %v223_v2  ;;  %v1170_v8 = vpop.f32.mrb[17].mxu0 }
 0x5a0   :  { %v571_v37 = vpop.f32.mrb[18].mxu0 }
 0x5a1   :  { %1253 = vtanh.f32 %v574_v6  ;;  %v1171_v10 = vpop.f32.mrb[19].mxu0 }
 0x5ab   :  { %v1254_v40 = vpop.eup %1253 }
 0x5ac   :  { %v578_v41 = vpack.c.bf16 %v1254_v40, %v1254_v40 }
 0x5ae   :  { %1189 = vmatmul.mubr.bf16.vlgmr.msra.gmra.mrb[12].mxu1 %v578_v41 }
 0x681   :  { %v613_v15 = vpop.f32.mrb[12].mxu1 }
 0x682   :  { %v619_v42 = vadd.f32 %v613_v15, %v228_v13  ;;  %v1190_v0 = vpop.f32.mrb[13].mxu1 }
 0x683   :  { %v616_v43 = vpop.f32.mrb[14].mxu1 }
 0x684   :  { %1255 = vtanh.f32 %v619_v42  ;;  %v1191_v17 = vpop.f32.mrb[15].mxu1 }
 0x68e   :  { %v1256_v44 = vpop.eup %1255 }
 0x68f   :  { %v623_v39 = vpack.c.bf16 %v1256_v44, %v1256_v44  ;;  %v708_v53 = vcombine.low %v1680_v34, %v1256_v44  ;;  %v709_v54 = vcombine.high %v1680_v34, %v1256_v44 }
 0x691   :  { %1209 = vmatmul.mubr.bf16.vlgmr.msra.gmra.mrb[20].mxu0 %v623_v39 }
 0x764   :  { %v658_v46 = vpop.f32.mrb[20].mxu0 }
 0x765   :  { %v664_v47 = vadd.f32 %v658_v46, %v231_v45  ;;  %v1210_v48 = vpop.f32.mrb[21].mxu0 }
 0x766   :  { %v661_v49 = vpop.f32.mrb[22].mxu0 }
 0x767   :  { %1257 = vtanh.f32 %v664_v47  ;;  %v1211_v50 = vpop.f32.mrb[23].mxu0 }
 0x771   :  { %v1258_v55 = vpop.eup %1257 }
 0x772   :  { %667 = vst [vmem:[#allocation11] sm:$0xff] %v1258_v55  ;;  %v724_v56 = vcombine.low %v1254_v40, %v1258_v55  ;;  %v725_v23 = vcombine.high %v1254_v40, %v1258_v55 }
 0x773   :  { %1336 = shalt.err (!%p1333_p0)
}
 0x774   :  { %s1337_s17 = scalar_lea.hbm %s1759_s6, 128 }
 0x775   :  { %p1338_p1 = scmp.ne.s32.totalorder %s1759_s6, %s1337_s17  ;;  %p1341_p2 = scmp.lt.u32.totalorder %s1337_s17, %s1759_s6 }
 0x777   :  { %p1343_p3 = pnand %p1341_p2, %p1338_p1 }
 0x779   :  { %1346 = shalt.err (!%p1343_p3)
}
 0x77a   :  { %873 = dma.vmem_to_hbm [thread:$0]  %s871_s13, 128, %s1759_s6, [#allocation12]   ;;  %v716_v57 = vrot.slane %v708_v53, %v1637_v11  ;;  %v723_v58 = vrot.slane %v709_v54, %v1637_v11  ;;  %v732_v59 = vrot.slane %v724_v56, %v1637_v11  ;;  %v739_v60 = vrot.slane %v725_v23, %v1637_v11 }
 0x77b   :  { %v748_v3 = vrot.slane %v740_v24, %v747_v38  ;;  %v755_v5 = vrot.slane %v741_v25, %v747_v38  ;;  %v764_v11 = vrot.slane %v756_v26, %v747_v38  ;;  %v771_v16 = vrot.slane %v757_v27, %v747_v38  ;;  %s1387_s6 = smov [#allocation10]  }
 0x77c   :  { %v772_v61 = vcombine.low %v716_v57, %v732_v59  ;;  %v773_v62 = vcombine.high %v716_v57, %v732_v59  ;;  %v788_v63 = vcombine.low %v723_v58, %v739_v60  ;;  %v789_v1 = vcombine.high %v723_v58, %v739_v60  ;;  %s857_s23 = sshll.u32 %s1387_s6, 4  ;;  %s858_s23 = int_to_ptr.vmem [resolvable:$true] %s857_s23 }
 0x77d   :  { %s1347_s25 = scalar_lea.vmem %s858_s23, 512  ;;  %p1352_p5 = scmp.lt.s32.totalorder %s858_s23, %s858_s23 }
 0x77e   :  { %v780_v7 = vrot.slane %v772_v61, %v747_v38  ;;  %v787_v9 = vrot.slane %v773_v62, %v747_v38  ;;  %v796_v12 = vrot.slane %v788_v63, %v747_v38  ;;  %v803_v14 = vrot.slane %v789_v1, %v747_v38  ;;  %p1348_p4 = scmp.ne.s32.totalorder %s858_s23, %s1347_s25  ;;  %p1353_p6 = scmp.lt.s32.totalorder %s1347_s25, %s1347_s25 }
 0x780   :  { %v804_v18 = vcombine.low %v748_v3, %v780_v7  ;;  %v805_v28 = vcombine.high %v748_v3, %v780_v7  ;;  %v806_v29 = vcombine.low %v755_v5, %v787_v9  ;;  %v807_v24 = vcombine.high %v755_v5, %v787_v9  ;;  %p1354_p7 = por %p1353_p6, %p1352_p5 }
 0x781   :  { %v808_v19 = vcombine.low %v764_v11, %v796_v12  ;;  %v809_v21 = vcombine.high %v764_v11, %v796_v12  ;;  %v810_v25 = vcombine.low %v771_v16, %v803_v14  ;;  %v811_v30 = vcombine.high %v771_v16, %v803_v14 }
 0x782   :  { %v924_v31 = vpack.c.bf16 %v805_v28, %v804_v18  ;;  %v929_v32 = vpack.c.bf16 %v807_v24, %v806_v29  ;;  %p1355_p8 = pnand %p1354_p7, %p1348_p4 }
 0x783   :  { %v934_v33 = vpack.c.bf16 %v809_v21, %v808_v19  ;;  %v939_v34 = vpack.c.bf16 %v811_v30, %v810_v25 }
 0x784   :  { %925 = vst [vmem:[#allocation10] sm:$0xff] %v924_v31   ;;  %941 = vst [vmem:[#allocation10 + $0x8] sm:$0xff] %v929_v32  }
 0x785   :  { %942 = vst [vmem:[#allocation10 + $0x10] sm:$0xff] %v934_v33   ;;  %943 = vst [vmem:[#allocation10 + $0x18] sm:$0xff] %v939_v34  }
 0x786   :  { %1358 = shalt.err (!%p1355_p8)
}
 0x787   :  { %s1359_s28 = scalar_lea.hbm %s1758_s5, 512 }
 0x788   :  { %p1360_p9 = scmp.ne.s32.totalorder %s1758_s5, %s1359_s28  ;;  %p1363_p10 = scmp.lt.u32.totalorder %s1359_s28, %s1758_s5 }
 0x78a   :  { %p1365_p11 = pnand %p1363_p10, %p1360_p9 }
 0x78c   :  { %1368 = shalt.err (!%p1365_p11)
}
 0x78d   :  { %863 = dma.vmem_to_hbm [thread:$0]  %s858_s23, 512, %s1758_s5, [#allocation6], %s1379_s9, %s1379_s9, %s1380_s10  }
 0x78e   :  { %1373 = dma.done.wait [#allocation6], 512  }
 0x78f   :  { %1374 = vsyncadd [#allocation6], 4294966784 }
 0x790   :  { %1375 = dma.done.wait [#allocation12], 128  }
 0x791   :  { %1376 = vsyncadd [#allocation12], 4294967168 }
 0x792   :  { %880 = vsyncpa [#allocation5], 1 }
 0x793   :  { %881 = vsyncpa [#allocation8], 1 }
 0x794   :  { %882 = vsyncpa [#allocation6], 1 }
 0x795   :  { %883 = vsyncpa [#allocation12], 1 }

</bundles_post_ra>
